<compile_context>
chip_gen: v7x
topology: tpu7x:2x2x1
jax: 0.10.0
libtpu: 0.0.40
codegen_flags: <defaults>
</compile_context>

<pallas_src>
import math
import functools

import jax
import jax.numpy as jnp
from jax.experimental import pallas as pl
from jax.experimental.pallas import tpu as pltpu


# ----------------------------------------------------------------------------
# Pallas kernel: one grid step = one encoder layer applied to one batch block.
# Grid = (batch_blocks, n_layer); layer axis is innermost & "arbitrary" so the
# output block (= the activation) stays resident in VMEM across the layer stack.
# ----------------------------------------------------------------------------
def _encoder_stack_kernel(x_ref, amask_ref,
                          wqkv_ref, bqkv_ref, wo_ref, bo_ref,
                          g1_ref, be1_ref, g2_ref, be2_ref,
                          w1_ref, b1_ref, w2_ref, b2_ref,
                          o_ref, ctx_ref, *, n_head):
    layer = pl.program_id(1)

    # Layer 0: seed the resident activation with the embedded input.
    @pl.when(layer == 0)
    def _():
        o_ref[...] = x_ref[...]

    bb, S, D = o_ref.shape
    dh = D // n_head
    scale = 1.0 / math.sqrt(dh)

    x = o_ref[...].reshape(bb * S, D)                 # fold batch into M

    # ---- fused QKV projection (one MXU weight push instead of three) -------
    qkv = jnp.dot(x, wqkv_ref[0], preferred_element_type=jnp.float32) + bqkv_ref[0]

    # ---- masked multi-head self-attention -----------------------------------
    # Per-(batch, head) contexts are written straight into a VMEM slab.
    for b in range(bb):                               # static unroll (bb small)
        amask_b = amask_ref[b]                        # (S, S) additive mask
        r0 = b * S
        for h in range(n_head):                       # static unroll
            c0 = h * dh
            qh = qkv[r0:r0 + S, c0:c0 + dh]
            kh = qkv[r0:r0 + S, D + c0:D + c0 + dh]
            vh = qkv[r0:r0 + S, 2 * D + c0:2 * D + c0 + dh]
            s = jnp.dot(qh, kh.T, preferred_element_type=jnp.float32) * scale
            s = s + amask_b                           # 0 keep / -1e9 masked
            s = s - jnp.max(s, axis=-1, keepdims=True)
            p = jnp.exp(s)
            p = p * pl.reciprocal(jnp.sum(p, axis=-1, keepdims=True), approx=True)
            ctx_ref[r0:r0 + S, c0:c0 + dh] = jnp.dot(
                p, vh, preferred_element_type=jnp.float32)

    attn_out = jnp.dot(ctx_ref[...], wo_ref[0],
                       preferred_element_type=jnp.float32) + bo_ref[0]

    def layer_norm(y, gamma, beta, eps=1e-12):        # matches custom LayerNorm
        mu = jnp.mean(y, axis=-1, keepdims=True)
        c = y - mu
        var = jnp.mean(c * c, axis=-1, keepdims=True)
        return gamma * (c * jax.lax.rsqrt(var + eps)) + beta

    # ---- residual + norm1 ----------------------------------------------------
    x1 = layer_norm(attn_out + x, g1_ref[0], be1_ref[0])

    # ---- position-wise feed-forward (Linear -> ReLU -> Linear) ---------------
    h1 = jnp.maximum(
        jnp.dot(x1, w1_ref[0], preferred_element_type=jnp.float32) + b1_ref[0], 0.0)
    f = jnp.dot(h1, w2_ref[0], preferred_element_type=jnp.float32) + b2_ref[0]

    # ---- residual + norm2 ----------------------------------------------------
    x2 = layer_norm(f + x1, g2_ref[0], be2_ref[0])
    o_ref[...] = x2.reshape(bb, S, D)


def encoder_stack_pallas(x, amask, stacked, n_head, batch_block=None):
    """x: (B, S, D) f32; amask: (B, S, S) additive mask (0 keep / -1e9 masked)."""
    B, S, D = x.shape
    L, _, H = stacked["w1"].shape
    if batch_block is None:
        # Keep >=2 "parallel" grid blocks when possible (v7x has 2 TensorCores),
        # while folding the rest of the batch into the matmul M dimension.
        batch_block = B // 2 if (B >= 2 and B % 2 == 0) else 1
    assert B % batch_block == 0
    nb = B // batch_block

    act_spec = pl.BlockSpec((batch_block, S, D), lambda b, l: (b, 0, 0))
    msk_spec = pl.BlockSpec((batch_block, S, S), lambda b, l: (b, 0, 0))

    def wspec(r, c):
        # One layer's weights per grid step (streamed along the layer axis).
        return pl.BlockSpec((1, r, c), lambda b, l: (l, 0, 0))

    in_specs = [
        act_spec, msk_spec,
        wspec(D, 3 * D), wspec(1, 3 * D),    # wqkv, bqkv
        wspec(D, D), wspec(1, D),            # wo, bo
        wspec(1, D), wspec(1, D),            # gamma1, beta1
        wspec(1, D), wspec(1, D),            # gamma2, beta2
        wspec(D, H), wspec(1, H),            # w1, b1
        wspec(H, D), wspec(1, D),            # w2, b2
    ]

    kernel = functools.partial(_encoder_stack_kernel, n_head=n_head)
    return pl.pallas_call(
        kernel,
        out_shape=jax.ShapeDtypeStruct((B, S, D), jnp.float32),
        grid_spec=pltpu.PrefetchScalarGridSpec(
            num_scalar_prefetch=0,
            grid=(nb, L),                    # layer axis innermost -> residency
            in_specs=in_specs,
            out_specs=act_spec,              # same block across layers => resident
            scratch_shapes=[pltpu.VMEM((batch_block * S, D), jnp.float32)],
        ),
        compiler_params=pltpu.CompilerParams(
            dimension_semantics=("parallel", "arbitrary")),
    )(x, amask,
      stacked["wqkv"], stacked["bqkv"], stacked["wo"], stacked["bo"],
      stacked["g1"], stacked["be1"], stacked["g2"], stacked["be2"],
      stacked["w1"], stacked["b1"], stacked["w2"], stacked["b2"])


# ----------------------------------------------------------------------------
# Glue (plain JAX): embedding lookup + sinusoidal positional encoding
# TODO(synk): token-embedding gather stays in plain JAX (data-dependent row
# gather; an in-kernel version would need a manual DMA gather).
# ----------------------------------------------------------------------------
def sinusoidal_pe(max_len, d_model):
    pos = jnp.arange(max_len, dtype=jnp.float32)[:, None]
    i = jnp.arange(0, d_model, 2, dtype=jnp.float32)
    div = jnp.exp(-jnp.log(10000.0) * i / d_model)
    pe = jnp.zeros((max_len, d_model), dtype=jnp.float32)
    pe = pe.at[:, 0::2].set(jnp.sin(pos * div))
    pe = pe.at[:, 1::2].set(jnp.cos(pos * div))
    return pe


def init_params(key, enc_vocab_size, max_len, d_model, ffn_hidden, n_layer):
    keys = jax.random.split(key, 1 + n_layer)
    emb = 0.02 * jax.random.normal(keys[0], (enc_vocab_size, d_model), jnp.float32)
    pe = sinusoidal_pe(max_len, d_model)

    s = 1.0 / math.sqrt(d_model)
    per_layer = []
    for li in range(n_layer):
        ks = jax.random.split(keys[1 + li], 6)
        wq = s * jax.random.normal(ks[0], (d_model, d_model), jnp.float32)
        wk = s * jax.random.normal(ks[1], (d_model, d_model), jnp.float32)
        wv = s * jax.random.normal(ks[2], (d_model, d_model), jnp.float32)
        per_layer.append({
            "wqkv": jnp.concatenate([wq, wk, wv], axis=1),        # (D, 3D) fused
            "bqkv": jnp.zeros((1, 3 * d_model), jnp.float32),
            "wo": s * jax.random.normal(ks[3], (d_model, d_model), jnp.float32),
            "bo": jnp.zeros((1, d_model), jnp.float32),
            "g1": jnp.ones((1, d_model), jnp.float32),
            "be1": jnp.zeros((1, d_model), jnp.float32),
            "g2": jnp.ones((1, d_model), jnp.float32),
            "be2": jnp.zeros((1, d_model), jnp.float32),
            "w1": s * jax.random.normal(ks[4], (d_model, ffn_hidden), jnp.float32),
            "b1": jnp.zeros((1, ffn_hidden), jnp.float32),
            "w2": (1.0 / math.sqrt(ffn_hidden)) *
                  jax.random.normal(ks[5], (ffn_hidden, d_model), jnp.float32),
            "b2": jnp.zeros((1, d_model), jnp.float32),
        })
    # Stack per-layer params on a leading (n_layer, ...) axis for the fused kernel.
    stacked = {k: jnp.stack([lp[k] for lp in per_layer], axis=0)
               for k in per_layer[0]}
    return {"emb": emb, "pe": pe, "stack": stacked}


def encoder_forward(tokens, s_mask, params, n_head):
    # TransformerEmbedding: token embedding + positional encoding (dropout = id)
    B, S = tokens.shape
    x = jnp.take(params["emb"], tokens, axis=0) + params["pe"][:S][None, :, :]
    # Additive attention mask is head-invariant: build it once in the wrapper.
    amask = jnp.where(s_mask == 0.0, jnp.float32(-1e9), jnp.float32(0.0))
    # Full EncoderLayer stack in a single fused Pallas call.
    return encoder_stack_pallas(x, amask, params["stack"], n_head)


# ----------------------------------------------------------------------------
if __name__ == "__main__":
    enc_vocab_size = 50
    max_len = 16
    d_model = 32
    ffn_hidden = 64
    n_head = 4
    n_layer = 2
    drop_p = 0.0   # dropout is identity (inference)

    B, S = 2, 8
    key = jax.random.PRNGKey(0)
    k_tok, k_par = jax.random.split(key)

    tokens = jax.random.randint(k_tok, (B, S), 0, enc_vocab_size, dtype=jnp.int32)
    s_mask = jnp.ones((B, S, S), dtype=jnp.float32)   # 1 = attend, 0 = masked

    params = init_params(k_par, enc_vocab_size, max_len, d_model, ffn_hidden, n_layer)

    out = encoder_forward(tokens, s_mask, params, n_head)
    out = jax.block_until_ready(out)
    assert out.shape == (B, S, d_model) and out.dtype == jnp.float32
    assert bool(jnp.all(jnp.isfinite(out)))
    print("KERNEL_OK")
</pallas_src>

<mosaic_0001>
module attributes {stable_mosaic.version = 11 : i64} {
  func.func @_encoder_stack_kernel(%arg0: i32, %arg1: i32, %arg2: memref<1x8x32xf32, #tpu.memory_space<vmem>>, %arg3: memref<1x8x8xf32, #tpu.memory_space<vmem>>, %arg4: memref<1x32x96xf32, #tpu.memory_space<vmem>>, %arg5: memref<1x1x96xf32, #tpu.memory_space<vmem>>, %arg6: memref<1x32x32xf32, #tpu.memory_space<vmem>>, %arg7: memref<1x1x32xf32, #tpu.memory_space<vmem>>, %arg8: memref<1x1x32xf32, #tpu.memory_space<vmem>>, %arg9: memref<1x1x32xf32, #tpu.memory_space<vmem>>, %arg10: memref<1x1x32xf32, #tpu.memory_space<vmem>>, %arg11: memref<1x1x32xf32, #tpu.memory_space<vmem>>, %arg12: memref<1x32x64xf32, #tpu.memory_space<vmem>>, %arg13: memref<1x1x64xf32, #tpu.memory_space<vmem>>, %arg14: memref<1x64x32xf32, #tpu.memory_space<vmem>>, %arg15: memref<1x1x32xf32, #tpu.memory_space<vmem>>, %arg16: memref<1x8x32xf32, #tpu.memory_space<vmem>>, %arg17: memref<8x32xf32, #tpu.memory_space<vmem>>) attributes {dimension_semantics = [#tpu.dimension_semantics<parallel>, #tpu.dimension_semantics<arbitrary>], iteration_bounds = array<i64: 2, 2>, scalar_prefetch = 0 : i64, scratch_operands = 1 : i64, tpu.core_type = #tpu.core_type<tc>, window_params = [{transform_indices = @transform_0, window_bounds = array<i64: 1, 8, 32>}, {transform_indices = @transform_1, window_bounds = array<i64: 1, 8, 8>}, {transform_indices = @transform_2, window_bounds = array<i64: 1, 32, 96>}, {transform_indices = @transform_3, window_bounds = array<i64: 1, 1, 96>}, {transform_indices = @transform_4, window_bounds = array<i64: 1, 32, 32>}, {transform_indices = @transform_5, window_bounds = array<i64: 1, 1, 32>}, {transform_indices = @transform_6, window_bounds = array<i64: 1, 1, 32>}, {transform_indices = @transform_7, window_bounds = array<i64: 1, 1, 32>}, {transform_indices = @transform_8, window_bounds = array<i64: 1, 1, 32>}, {transform_indices = @transform_9, window_bounds = array<i64: 1, 1, 32>}, {transform_indices = @transform_10, window_bounds = array<i64: 1, 32, 64>}, {transform_indices = @transform_11, window_bounds = array<i64: 1, 1, 64>}, {transform_indices = @transform_12, window_bounds = array<i64: 1, 64, 32>}, {transform_indices = @transform_13, window_bounds = array<i64: 1, 1, 32>}, {transform_indices = @transform_14, window_bounds = array<i64: 1, 8, 32>}]} {
    %c0_i32 = arith.constant 0 : i32
    %0 = arith.cmpi eq, %arg1, %c0_i32 : i32
    %1 = arith.extui %0 : i1 to i32
    %c0_i32_0 = arith.constant 0 : i32
    %2 = arith.cmpi ne, %1, %c0_i32_0 : i32
    scf.if %2 {
      %c0_86 = arith.constant 0 : index
      %c0_87 = arith.constant 0 : index
      %c0_88 = arith.constant 0 : index
      %170 = vector.load %arg2[%c0_86, %c0_87, %c0_88] : memref<1x8x32xf32, #tpu.memory_space<vmem>>, vector<1x8x32xf32>
      %c0_89 = arith.constant 0 : index
      %c0_90 = arith.constant 0 : index
      %c0_91 = arith.constant 0 : index
      %171 = vector.load %arg16[%c0_89, %c0_90, %c0_91] : memref<1x8x32xf32, #tpu.memory_space<vmem>>, vector<1x8x32xf32>
      tpu.vector_store %arg16[%c0_89, %c0_90, %c0_91], %170 {strides = array<i32>} : memref<1x8x32xf32, #tpu.memory_space<vmem>>, vector<1x8x32xf32>,
    } else {
    }
    %c0 = arith.constant 0 : index
    %c0_1 = arith.constant 0 : index
    %c0_2 = arith.constant 0 : index
    %3 = vector.load %arg16[%c0, %c0_1, %c0_2] : memref<1x8x32xf32, #tpu.memory_space<vmem>>, vector<1x8x32xf32>
    %4 = vector.shape_cast %3 : vector<1x8x32xf32> to vector<8x32xf32>
    %c0_3 = arith.constant 0 : index
    %c0_4 = arith.constant 0 : index
    %c0_5 = arith.constant 0 : index
    %5 = vector.load %arg4[%c0_3, %c0_4, %c0_5] : memref<1x32x96xf32, #tpu.memory_space<vmem>>, vector<1x32x96xf32>
    %6 = vector.shape_cast %5 : vector<1x32x96xf32> to vector<32x96xf32>
    %cst = arith.constant dense<0.000000e+00> : vector<8x96xf32>
    %7 = tpu.matmul %4, %6, %cst {dimension_numbers = #tpu.dot_dimension_numbers<[1], [0], [0], [1], [0, 0, 1, 1], [], []>} : vector<8x32xf32>, vector<32x96xf32>, vector<8x96xf32> -> vector<8x96xf32>
    %c0_6 = arith.constant 0 : index
    %c0_7 = arith.constant 0 : index
    %c0_8 = arith.constant 0 : index
    %8 = vector.load %arg5[%c0_6, %c0_7, %c0_8] : memref<1x1x96xf32, #tpu.memory_space<vmem>>, vector<1x1x96xf32>
    %9 = vector.shape_cast %8 : vector<1x1x96xf32> to vector<1x96xf32>
    %10 = vector.broadcast %9 : vector<1x96xf32> to vector<8x96xf32>
    %11 = arith.addf %7, %10 : vector<8x96xf32>
    %c0_9 = arith.constant 0 : index
    %c0_10 = arith.constant 0 : index
    %c0_11 = arith.constant 0 : index
    %12 = vector.load %arg3[%c0_9, %c0_10, %c0_11] : memref<1x8x8xf32, #tpu.memory_space<vmem>>, vector<1x8x8xf32>
    %13 = vector.shape_cast %12 : vector<1x8x8xf32> to vector<8x8xf32>
    %14 = vector.extract_strided_slice %11 {offsets = [0, 0], sizes = [8, 8], strides = [1, 1]} : vector<8x96xf32> to vector<8x8xf32>
    %15 = vector.extract_strided_slice %11 {offsets = [0, 32], sizes = [8, 8], strides = [1, 1]} : vector<8x96xf32> to vector<8x8xf32>
    %16 = vector.extract_strided_slice %11 {offsets = [0, 64], sizes = [8, 8], strides = [1, 1]} : vector<8x96xf32> to vector<8x8xf32>
    %17 = tpu.transpose %15, [1, 0] : vector<8x8xf32> -> vector<8x8xf32>
    %cst_12 = arith.constant dense<0.000000e+00> : vector<8x8xf32>
    %18 = tpu.matmul %14, %17, %cst_12 {dimension_numbers = #tpu.dot_dimension_numbers<[1], [0], [0], [1], [0, 0, 1, 1], [], []>} : vector<8x8xf32>, vector<8x8xf32>, vector<8x8xf32> -> vector<8x8xf32>
    %cst_13 = arith.constant 0.353553385 : f32
    %19 = vector.broadcast %cst_13 : f32 to vector<8x8xf32>
    %20 = arith.mulf %18, %19 : vector<8x8xf32>
    %21 = arith.addf %20, %13 : vector<8x8xf32>
    %cst_14 = arith.constant dense<0xFF800000> : vector<8xf32>
    %22 = vector.multi_reduction <maximumf>, %21, %cst_14 [1] : vector<8x8xf32> to vector<8xf32>
    %23 = vector.shape_cast %22 : vector<8xf32> to vector<8x1xf32>
    %24 = vector.broadcast %23 : vector<8x1xf32> to vector<8x8xf32>
    %25 = arith.subf %21, %24 : vector<8x8xf32>
    %26 = math.exp %25 : vector<8x8xf32>
    %cst_15 = arith.constant dense<0.000000e+00> : vector<8xf32>
    %27 = vector.multi_reduction <add>, %26, %cst_15 [1] : vector<8x8xf32> to vector<8xf32>
    %28 = vector.shape_cast %27 : vector<8xf32> to vector<8x1xf32>
    %29 = tpu.reciprocal %28 {approx = true} : vector<8x1xf32> -> vector<8x1xf32>
    %30 = vector.broadcast %29 : vector<8x1xf32> to vector<8x8xf32>
    %31 = arith.mulf %26, %30 : vector<8x8xf32>
    %cst_16 = arith.constant dense<0.000000e+00> : vector<8x8xf32>
    %32 = tpu.matmul %31, %16, %cst_16 {dimension_numbers = #tpu.dot_dimension_numbers<[1], [0], [0], [1], [0, 0, 1, 1], [], []>} : vector<8x8xf32>, vector<8x8xf32>, vector<8x8xf32> -> vector<8x8xf32>
    %c0_17 = arith.constant 0 : index
    %c0_18 = arith.constant 0 : index
    %33 = vector.load %arg17[%c0_17, %c0_18] : memref<8x32xf32, #tpu.memory_space<vmem>>, vector<8x8xf32>
    tpu.vector_store %arg17[%c0_17, %c0_18], %32 {strides = array<i32>} : memref<8x32xf32, #tpu.memory_space<vmem>>, vector<8x8xf32>,
    %34 = vector.extract_strided_slice %11 {offsets = [0, 8], sizes = [8, 8], strides = [1, 1]} : vector<8x96xf32> to vector<8x8xf32>
    %35 = vector.extract_strided_slice %11 {offsets = [0, 40], sizes = [8, 8], strides = [1, 1]} : vector<8x96xf32> to vector<8x8xf32>
    %36 = vector.extract_strided_slice %11 {offsets = [0, 72], sizes = [8, 8], strides = [1, 1]} : vector<8x96xf32> to vector<8x8xf32>
    %37 = tpu.transpose %35, [1, 0] : vector<8x8xf32> -> vector<8x8xf32>
    %cst_19 = arith.constant dense<0.000000e+00> : vector<8x8xf32>
    %38 = tpu.matmul %34, %37, %cst_19 {dimension_numbers = #tpu.dot_dimension_numbers<[1], [0], [0], [1], [0, 0, 1, 1], [], []>} : vector<8x8xf32>, vector<8x8xf32>, vector<8x8xf32> -> vector<8x8xf32>
    %cst_20 = arith.constant 0.353553385 : f32
    %39 = vector.broadcast %cst_20 : f32 to vector<8x8xf32>
    %40 = arith.mulf %38, %39 : vector<8x8xf32>
    %41 = arith.addf %40, %13 : vector<8x8xf32>
    %cst_21 = arith.constant dense<0xFF800000> : vector<8xf32>
    %42 = vector.multi_reduction <maximumf>, %41, %cst_21 [1] : vector<8x8xf32> to vector<8xf32>
    %43 = vector.shape_cast %42 : vector<8xf32> to vector<8x1xf32>
    %44 = vector.broadcast %43 : vector<8x1xf32> to vector<8x8xf32>
    %45 = arith.subf %41, %44 : vector<8x8xf32>
    %46 = math.exp %45 : vector<8x8xf32>
    %cst_22 = arith.constant dense<0.000000e+00> : vector<8xf32>
    %47 = vector.multi_reduction <add>, %46, %cst_22 [1] : vector<8x8xf32> to vector<8xf32>
    %48 = vector.shape_cast %47 : vector<8xf32> to vector<8x1xf32>
    %49 = tpu.reciprocal %48 {approx = true} : vector<8x1xf32> -> vector<8x1xf32>
    %50 = vector.broadcast %49 : vector<8x1xf32> to vector<8x8xf32>
    %51 = arith.mulf %46, %50 : vector<8x8xf32>
    %cst_23 = arith.constant dense<0.000000e+00> : vector<8x8xf32>
    %52 = tpu.matmul %51, %36, %cst_23 {dimension_numbers = #tpu.dot_dimension_numbers<[1], [0], [0], [1], [0, 0, 1, 1], [], []>} : vector<8x8xf32>, vector<8x8xf32>, vector<8x8xf32> -> vector<8x8xf32>
    %c0_24 = arith.constant 0 : index
    %c8 = arith.constant 8 : index
    %53 = vector.load %arg17[%c0_24, %c8] : memref<8x32xf32, #tpu.memory_space<vmem>>, vector<8x8xf32>
    tpu.vector_store %arg17[%c0_24, %c8], %52 {strides = array<i32>} : memref<8x32xf32, #tpu.memory_space<vmem>>, vector<8x8xf32>,
    %54 = vector.extract_strided_slice %11 {offsets = [0, 16], sizes = [8, 8], strides = [1, 1]} : vector<8x96xf32> to vector<8x8xf32>
    %55 = vector.extract_strided_slice %11 {offsets = [0, 48], sizes = [8, 8], strides = [1, 1]} : vector<8x96xf32> to vector<8x8xf32>
    %56 = vector.extract_strided_slice %11 {offsets = [0, 80], sizes = [8, 8], strides = [1, 1]} : vector<8x96xf32> to vector<8x8xf32>
    %57 = tpu.transpose %55, [1, 0] : vector<8x8xf32> -> vector<8x8xf32>
    %cst_25 = arith.constant dense<0.000000e+00> : vector<8x8xf32>
    %58 = tpu.matmul %54, %57, %cst_25 {dimension_numbers = #tpu.dot_dimension_numbers<[1], [0], [0], [1], [0, 0, 1, 1], [], []>} : vector<8x8xf32>, vector<8x8xf32>, vector<8x8xf32> -> vector<8x8xf32>
    %cst_26 = arith.constant 0.353553385 : f32
    %59 = vector.broadcast %cst_26 : f32 to vector<8x8xf32>
    %60 = arith.mulf %58, %59 : vector<8x8xf32>
    %61 = arith.addf %60, %13 : vector<8x8xf32>
    %cst_27 = arith.constant dense<0xFF800000> : vector<8xf32>
    %62 = vector.multi_reduction <maximumf>, %61, %cst_27 [1] : vector<8x8xf32> to vector<8xf32>
    %63 = vector.shape_cast %62 : vector<8xf32> to vector<8x1xf32>
    %64 = vector.broadcast %63 : vector<8x1xf32> to vector<8x8xf32>
    %65 = arith.subf %61, %64 : vector<8x8xf32>
    %66 = math.exp %65 : vector<8x8xf32>
    %cst_28 = arith.constant dense<0.000000e+00> : vector<8xf32>
    %67 = vector.multi_reduction <add>, %66, %cst_28 [1] : vector<8x8xf32> to vector<8xf32>
    %68 = vector.shape_cast %67 : vector<8xf32> to vector<8x1xf32>
    %69 = tpu.reciprocal %68 {approx = true} : vector<8x1xf32> -> vector<8x1xf32>
    %70 = vector.broadcast %69 : vector<8x1xf32> to vector<8x8xf32>
    %71 = arith.mulf %66, %70 : vector<8x8xf32>
    %cst_29 = arith.constant dense<0.000000e+00> : vector<8x8xf32>
    %72 = tpu.matmul %71, %56, %cst_29 {dimension_numbers = #tpu.dot_dimension_numbers<[1], [0], [0], [1], [0, 0, 1, 1], [], []>} : vector<8x8xf32>, vector<8x8xf32>, vector<8x8xf32> -> vector<8x8xf32>
    %c0_30 = arith.constant 0 : index
    %c16 = arith.constant 16 : index
    %73 = vector.load %arg17[%c0_30, %c16] : memref<8x32xf32, #tpu.memory_space<vmem>>, vector<8x8xf32>
    tpu.vector_store %arg17[%c0_30, %c16], %72 {strides = array<i32>} : memref<8x32xf32, #tpu.memory_space<vmem>>, vector<8x8xf32>,
    %74 = vector.extract_strided_slice %11 {offsets = [0, 24], sizes = [8, 8], strides = [1, 1]} : vector<8x96xf32> to vector<8x8xf32>
    %75 = vector.extract_strided_slice %11 {offsets = [0, 56], sizes = [8, 8], strides = [1, 1]} : vector<8x96xf32> to vector<8x8xf32>
    %76 = vector.extract_strided_slice %11 {offsets = [0, 88], sizes = [8, 8], strides = [1, 1]} : vector<8x96xf32> to vector<8x8xf32>
    %77 = tpu.transpose %75, [1, 0] : vector<8x8xf32> -> vector<8x8xf32>
    %cst_31 = arith.constant dense<0.000000e+00> : vector<8x8xf32>
    %78 = tpu.matmul %74, %77, %cst_31 {dimension_numbers = #tpu.dot_dimension_numbers<[1], [0], [0], [1], [0, 0, 1, 1], [], []>} : vector<8x8xf32>, vector<8x8xf32>, vector<8x8xf32> -> vector<8x8xf32>
    %cst_32 = arith.constant 0.353553385 : f32
    %79 = vector.broadcast %cst_32 : f32 to vector<8x8xf32>
    %80 = arith.mulf %78, %79 : vector<8x8xf32>
    %81 = arith.addf %80, %13 : vector<8x8xf32>
    %cst_33 = arith.constant dense<0xFF800000> : vector<8xf32>
    %82 = vector.multi_reduction <maximumf>, %81, %cst_33 [1] : vector<8x8xf32> to vector<8xf32>
    %83 = vector.shape_cast %82 : vector<8xf32> to vector<8x1xf32>
    %84 = vector.broadcast %83 : vector<8x1xf32> to vector<8x8xf32>
    %85 = arith.subf %81, %84 : vector<8x8xf32>
    %86 = math.exp %85 : vector<8x8xf32>
    %cst_34 = arith.constant dense<0.000000e+00> : vector<8xf32>
    %87 = vector.multi_reduction <add>, %86, %cst_34 [1] : vector<8x8xf32> to vector<8xf32>
    %88 = vector.shape_cast %87 : vector<8xf32> to vector<8x1xf32>
    %89 = tpu.reciprocal %88 {approx = true} : vector<8x1xf32> -> vector<8x1xf32>
    %90 = vector.broadcast %89 : vector<8x1xf32> to vector<8x8xf32>
    %91 = arith.mulf %86, %90 : vector<8x8xf32>
    %cst_35 = arith.constant dense<0.000000e+00> : vector<8x8xf32>
    %92 = tpu.matmul %91, %76, %cst_35 {dimension_numbers = #tpu.dot_dimension_numbers<[1], [0], [0], [1], [0, 0, 1, 1], [], []>} : vector<8x8xf32>, vector<8x8xf32>, vector<8x8xf32> -> vector<8x8xf32>
    %c0_36 = arith.constant 0 : index
    %c24 = arith.constant 24 : index
    %93 = vector.load %arg17[%c0_36, %c24] : memref<8x32xf32, #tpu.memory_space<vmem>>, vector<8x8xf32>
    tpu.vector_store %arg17[%c0_36, %c24], %92 {strides = array<i32>} : memref<8x32xf32, #tpu.memory_space<vmem>>, vector<8x8xf32>,
    %c0_37 = arith.constant 0 : index
    %c0_38 = arith.constant 0 : index
    %94 = vector.load %arg17[%c0_37, %c0_38] : memref<8x32xf32, #tpu.memory_space<vmem>>, vector<8x32xf32>
    %c0_39 = arith.constant 0 : index
    %c0_40 = arith.constant 0 : index
    %c0_41 = arith.constant 0 : index
    %95 = vector.load %arg6[%c0_39, %c0_40, %c0_41] : memref<1x32x32xf32, #tpu.memory_space<vmem>>, vector<1x32x32xf32>
    %96 = vector.shape_cast %95 : vector<1x32x32xf32> to vector<32x32xf32>
    %cst_42 = arith.constant dense<0.000000e+00> : vector<8x32xf32>
    %97 = tpu.matmul %94, %96, %cst_42 {dimension_numbers = #tpu.dot_dimension_numbers<[1], [0], [0], [1], [0, 0, 1, 1], [], []>} : vector<8x32xf32>, vector<32x32xf32>, vector<8x32xf32> -> vector<8x32xf32>
    %c0_43 = arith.constant 0 : index
    %c0_44 = arith.constant 0 : index
    %c0_45 = arith.constant 0 : index
    %98 = vector.load %arg7[%c0_43, %c0_44, %c0_45] : memref<1x1x32xf32, #tpu.memory_space<vmem>>, vector<1x1x32xf32>
    %99 = vector.shape_cast %98 : vector<1x1x32xf32> to vector<1x32xf32>
    %100 = vector.broadcast %99 : vector<1x32xf32> to vector<8x32xf32>
    %101 = arith.addf %97, %100 : vector<8x32xf32>
    %102 = arith.addf %101, %4 : vector<8x32xf32>
    %c0_46 = arith.constant 0 : index
    %c0_47 = arith.constant 0 : index
    %c0_48 = arith.constant 0 : index
    %103 = vector.load %arg8[%c0_46, %c0_47, %c0_48] : memref<1x1x32xf32, #tpu.memory_space<vmem>>, vector<1x1x32xf32>
    %104 = vector.shape_cast %103 : vector<1x1x32xf32> to vector<1x32xf32>
    %c0_49 = arith.constant 0 : index
    %c0_50 = arith.constant 0 : index
    %c0_51 = arith.constant 0 : index
    %105 = vector.load %arg9[%c0_49, %c0_50, %c0_51] : memref<1x1x32xf32, #tpu.memory_space<vmem>>, vector<1x1x32xf32>
    %106 = vector.shape_cast %105 : vector<1x1x32xf32> to vector<1x32xf32>
    %cst_52 = arith.constant dense<0.000000e+00> : vector<8xf32>
    %107 = vector.multi_reduction <add>, %102, %cst_52 [1] : vector<8x32xf32> to vector<8xf32>
    %108 = vector.shape_cast %107 : vector<8xf32> to vector<8x1xf32>
    %cst_53 = arith.constant 3.200000e+01 : f32
    %109 = vector.broadcast %cst_53 : f32 to vector<8x1xf32>
    %110 = arith.divf %108, %109 : vector<8x1xf32>
    %111 = vector.broadcast %110 : vector<8x1xf32> to vector<8x32xf32>
    %112 = arith.subf %102, %111 : vector<8x32xf32>
    %113 = arith.mulf %112, %112 : vector<8x32xf32>
    %cst_54 = arith.constant dense<0.000000e+00> : vector<8xf32>
    %114 = vector.multi_reduction <add>, %113, %cst_54 [1] : vector<8x32xf32> to vector<8xf32>
    %115 = vector.shape_cast %114 : vector<8xf32> to vector<8x1xf32>
    %cst_55 = arith.constant 3.200000e+01 : f32
    %116 = vector.broadcast %cst_55 : f32 to vector<8x1xf32>
    %117 = arith.divf %115, %116 : vector<8x1xf32>
    %cst_56 = arith.constant 9.99999996E-13 : f32
    %118 = vector.broadcast %cst_56 : f32 to vector<8x1xf32>
    %119 = arith.addf %117, %118 : vector<8x1xf32>
    %120 = math.rsqrt %119 : vector<8x1xf32>
    %121 = vector.broadcast %120 : vector<8x1xf32> to vector<8x32xf32>
    %122 = arith.mulf %112, %121 : vector<8x32xf32>
    %123 = vector.broadcast %104 : vector<1x32xf32> to vector<8x32xf32>
    %124 = arith.mulf %123, %122 : vector<8x32xf32>
    %125 = vector.broadcast %106 : vector<1x32xf32> to vector<8x32xf32>
    %126 = arith.addf %124, %125 : vector<8x32xf32>
    %c0_57 = arith.constant 0 : index
    %c0_58 = arith.constant 0 : index
    %c0_59 = arith.constant 0 : index
    %127 = vector.load %arg12[%c0_57, %c0_58, %c0_59] : memref<1x32x64xf32, #tpu.memory_space<vmem>>, vector<1x32x64xf32>
    %128 = vector.shape_cast %127 : vector<1x32x64xf32> to vector<32x64xf32>
    %cst_60 = arith.constant dense<0.000000e+00> : vector<8x64xf32>
    %129 = tpu.matmul %126, %128, %cst_60 {dimension_numbers = #tpu.dot_dimension_numbers<[1], [0], [0], [1], [0, 0, 1, 1], [], []>} : vector<8x32xf32>, vector<32x64xf32>, vector<8x64xf32> -> vector<8x64xf32>
    %c0_61 = arith.constant 0 : index
    %c0_62 = arith.constant 0 : index
    %c0_63 = arith.constant 0 : index
    %130 = vector.load %arg13[%c0_61, %c0_62, %c0_63] : memref<1x1x64xf32, #tpu.memory_space<vmem>>, vector<1x1x64xf32>
    %131 = vector.shape_cast %130 : vector<1x1x64xf32> to vector<1x64xf32>
    %132 = vector.broadcast %131 : vector<1x64xf32> to vector<8x64xf32>
    %133 = arith.addf %129, %132 : vector<8x64xf32>
    %cst_64 = arith.constant 0.000000e+00 : f32
    %134 = vector.broadcast %cst_64 : f32 to vector<8x64xf32>
    %135 = arith.maximumf %133, %134 : vector<8x64xf32>
    %c0_65 = arith.constant 0 : index
    %c0_66 = arith.constant 0 : index
    %c0_67 = arith.constant 0 : index
    %136 = vector.load %arg14[%c0_65, %c0_66, %c0_67] : memref<1x64x32xf32, #tpu.memory_space<vmem>>, vector<1x64x32xf32>
    %137 = vector.shape_cast %136 : vector<1x64x32xf32> to vector<64x32xf32>
    %cst_68 = arith.constant dense<0.000000e+00> : vector<8x32xf32>
    %138 = tpu.matmul %135, %137, %cst_68 {dimension_numbers = #tpu.dot_dimension_numbers<[1], [0], [0], [1], [0, 0, 1, 1], [], []>} : vector<8x64xf32>, vector<64x32xf32>, vector<8x32xf32> -> vector<8x32xf32>
    %c0_69 = arith.constant 0 : index
    %c0_70 = arith.constant 0 : index
    %c0_71 = arith.constant 0 : index
    %139 = vector.load %arg15[%c0_69, %c0_70, %c0_71] : memref<1x1x32xf32, #tpu.memory_space<vmem>>, vector<1x1x32xf32>
    %140 = vector.shape_cast %139 : vector<1x1x32xf32> to vector<1x32xf32>
    %141 = vector.broadcast %140 : vector<1x32xf32> to vector<8x32xf32>
    %142 = arith.addf %138, %141 : vector<8x32xf32>
    %143 = arith.addf %142, %126 : vector<8x32xf32>
    %c0_72 = arith.constant 0 : index
    %c0_73 = arith.constant 0 : index
    %c0_74 = arith.constant 0 : index
    %144 = vector.load %arg10[%c0_72, %c0_73, %c0_74] : memref<1x1x32xf32, #tpu.memory_space<vmem>>, vector<1x1x32xf32>
    %145 = vector.shape_cast %144 : vector<1x1x32xf32> to vector<1x32xf32>
    %c0_75 = arith.constant 0 : index
    %c0_76 = arith.constant 0 : index
    %c0_77 = arith.constant 0 : index
    %146 = vector.load %arg11[%c0_75, %c0_76, %c0_77] : memref<1x1x32xf32, #tpu.memory_space<vmem>>, vector<1x1x32xf32>
    %147 = vector.shape_cast %146 : vector<1x1x32xf32> to vector<1x32xf32>
    %cst_78 = arith.constant dense<0.000000e+00> : vector<8xf32>
    %148 = vector.multi_reduction <add>, %143, %cst_78 [1] : vector<8x32xf32> to vector<8xf32>
    %149 = vector.shape_cast %148 : vector<8xf32> to vector<8x1xf32>
    %cst_79 = arith.constant 3.200000e+01 : f32
    %150 = vector.broadcast %cst_79 : f32 to vector<8x1xf32>
    %151 = arith.divf %149, %150 : vector<8x1xf32>
    %152 = vector.broadcast %151 : vector<8x1xf32> to vector<8x32xf32>
    %153 = arith.subf %143, %152 : vector<8x32xf32>
    %154 = arith.mulf %153, %153 : vector<8x32xf32>
    %cst_80 = arith.constant dense<0.000000e+00> : vector<8xf32>
    %155 = vector.multi_reduction <add>, %154, %cst_80 [1] : vector<8x32xf32> to vector<8xf32>
    %156 = vector.shape_cast %155 : vector<8xf32> to vector<8x1xf32>
    %cst_81 = arith.constant 3.200000e+01 : f32
    %157 = vector.broadcast %cst_81 : f32 to vector<8x1xf32>
    %158 = arith.divf %156, %157 : vector<8x1xf32>
    %cst_82 = arith.constant 9.99999996E-13 : f32
    %159 = vector.broadcast %cst_82 : f32 to vector<8x1xf32>
    %160 = arith.addf %158, %159 : vector<8x1xf32>
    %161 = math.rsqrt %160 : vector<8x1xf32>
    %162 = vector.broadcast %161 : vector<8x1xf32> to vector<8x32xf32>
    %163 = arith.mulf %153, %162 : vector<8x32xf32>
    %164 = vector.broadcast %145 : vector<1x32xf32> to vector<8x32xf32>
    %165 = arith.mulf %164, %163 : vector<8x32xf32>
    %166 = vector.broadcast %147 : vector<1x32xf32> to vector<8x32xf32>
    %167 = arith.addf %165, %166 : vector<8x32xf32>
    %168 = vector.shape_cast %167 : vector<8x32xf32> to vector<1x8x32xf32>
    %c0_83 = arith.constant 0 : index
    %c0_84 = arith.constant 0 : index
    %c0_85 = arith.constant 0 : index
    %169 = vector.load %arg16[%c0_83, %c0_84, %c0_85] : memref<1x8x32xf32, #tpu.memory_space<vmem>>, vector<1x8x32xf32>
    tpu.vector_store %arg16[%c0_83, %c0_84, %c0_85], %168 {strides = array<i32>} : memref<1x8x32xf32, #tpu.memory_space<vmem>>, vector<1x8x32xf32>,
    return
  }
  func.func @transform_0(%arg0: i32, %arg1: i32) -> (i32, i32, i32) {
    %c0_i32 = arith.constant 0 : i32
    %c0_i32_0 = arith.constant 0 : i32
    %c0_i32_1 = arith.constant 0 : i32
    return %arg0, %c0_i32, %c0_i32_0 : i32, i32, i32
  }
  func.func @transform_1(%arg0: i32, %arg1: i32) -> (i32, i32, i32) {
    %c0_i32 = arith.constant 0 : i32
    %c0_i32_0 = arith.constant 0 : i32
    %c0_i32_1 = arith.constant 0 : i32
    return %arg0, %c0_i32, %c0_i32_0 : i32, i32, i32
  }
  func.func @transform_2(%arg0: i32, %arg1: i32) -> (i32, i32, i32) {
    %c0_i32 = arith.constant 0 : i32
    %c0_i32_0 = arith.constant 0 : i32
    %c0_i32_1 = arith.constant 0 : i32
    return %arg1, %c0_i32, %c0_i32_0 : i32, i32, i32
  }
  func.func @transform_3(%arg0: i32, %arg1: i32) -> (i32, i32, i32) {
    %c0_i32 = arith.constant 0 : i32
    %c0_i32_0 = arith.constant 0 : i32
    %c0_i32_1 = arith.constant 0 : i32
    return %arg1, %c0_i32, %c0_i32_0 : i32, i32, i32
  }
  func.func @transform_4(%arg0: i32, %arg1: i32) -> (i32, i32, i32) {
    %c0_i32 = arith.constant 0 : i32
    %c0_i32_0 = arith.constant 0 : i32
    %c0_i32_1 = arith.constant 0 : i32
    return %arg1, %c0_i32, %c0_i32_0 : i32, i32, i32
  }
  func.func @transform_5(%arg0: i32, %arg1: i32) -> (i32, i32, i32) {
    %c0_i32 = arith.constant 0 : i32
    %c0_i32_0 = arith.constant 0 : i32
    %c0_i32_1 = arith.constant 0 : i32
    return %arg1, %c0_i32, %c0_i32_0 : i32, i32, i32
  }
  func.func @transform_6(%arg0: i32, %arg1: i32) -> (i32, i32, i32) {
    %c0_i32 = arith.constant 0 : i32
    %c0_i32_0 = arith.constant 0 : i32
    %c0_i32_1 = arith.constant 0 : i32
    return %arg1, %c0_i32, %c0_i32_0 : i32, i32, i32
  }
  func.func @transform_7(%arg0: i32, %arg1: i32) -> (i32, i32, i32) {
    %c0_i32 = arith.constant 0 : i32
    %c0_i32_0 = arith.constant 0 : i32
    %c0_i32_1 = arith.constant 0 : i32
    return %arg1, %c0_i32, %c0_i32_0 : i32, i32, i32
  }
  func.func @transform_8(%arg0: i32, %arg1: i32) -> (i32, i32, i32) {
    %c0_i32 = arith.constant 0 : i32
    %c0_i32_0 = arith.constant 0 : i32
    %c0_i32_1 = arith.constant 0 : i32
    return %arg1, %c0_i32, %c0_i32_0 : i32, i32, i32
  }
  func.func @transform_9(%arg0: i32, %arg1: i32) -> (i32, i32, i32) {
    %c0_i32 = arith.constant 0 : i32
    %c0_i32_0 = arith.constant 0 : i32
    %c0_i32_1 = arith.constant 0 : i32
    return %arg1, %c0_i32, %c0_i32_0 : i32, i32, i32
  }
  func.func @transform_10(%arg0: i32, %arg1: i32) -> (i32, i32, i32) {
    %c0_i32 = arith.constant 0 : i32
    %c0_i32_0 = arith.constant 0 : i32
    %c0_i32_1 = arith.constant 0 : i32
    return %arg1, %c0_i32, %c0_i32_0 : i32, i32, i32
  }
  func.func @transform_11(%arg0: i32, %arg1: i32) -> (i32, i32, i32) {
    %c0_i32 = arith.constant 0 : i32
    %c0_i32_0 = arith.constant 0 : i32
    %c0_i32_1 = arith.constant 0 : i32
    return %arg1, %c0_i32, %c0_i32_0 : i32, i32, i32
  }
  func.func @transform_12(%arg0: i32, %arg1: i32) -> (i32, i32, i32) {
    %c0_i32 = arith.constant 0 : i32
    %c0_i32_0 = arith.constant 0 : i32
    %c0_i32_1 = arith.constant 0 : i32
    return %arg1, %c0_i32, %c0_i32_0 : i32, i32, i32
  }
  func.func @transform_13(%arg0: i32, %arg1: i32) -> (i32, i32, i32) {
    %c0_i32 = arith.constant 0 : i32
    %c0_i32_0 = arith.constant 0 : i32
    %c0_i32_1 = arith.constant 0 : i32
    return %arg1, %c0_i32, %c0_i32_0 : i32, i32, i32
  }
  func.func @transform_14(%arg0: i32, %arg1: i32) -> (i32, i32, i32) {
    %c0_i32 = arith.constant 0 : i32
    %c0_i32_0 = arith.constant 0 : i32
    %c0_i32_1 = arith.constant 0 : i32
    return %arg0, %c0_i32, %c0_i32_0 : i32, i32, i32
  }
}

</mosaic_0001>

<bundles_post_ra>
// kernel: tpu_custom_call.1
= control target key start
LH: loop header
LB: loop body
LE: loop exit
PB: predicated region body
PF: predicated region fallthrough
CT: control target
= control target key end

     0   :  { %s3111_s0 = inlined_call_operand.hbm [shape: f32[2,8,32], index: 0, kind: input, shape index: {}]   ;;  %s3112_s1 = inlined_call_operand.hbm [shape: f32[2,8,8], index: 1, kind: input, shape index: {}]   ;;  %s3113_s2 = inlined_call_operand.vmem [shape: f32[2,32,96], index: 2, kind: input, shape index: {}]   ;;  %s3114_s3 = inlined_call_operand.vmem [shape: f32[2,1,96], index: 3, kind: input, shape index: {}]   ;;  %s3115_s4 = inlined_call_operand.vmem [shape: f32[2,32,32], index: 4, kind: input, shape index: {}]   ;;  %s3116_s5 = inlined_call_operand.vmem [shape: f32[2,1,32], index: 5, kind: input, shape index: {}]   ;;  %s3117_s6 = inlined_call_operand.vmem [shape: f32[2,1,32], index: 6, kind: input, shape index: {}]   ;;  %s3118_s7 = inlined_call_operand.vmem [shape: f32[2,1,32], index: 7, kind: input, shape index: {}]   ;;  %s3119_s8 = inlined_call_operand.vmem [shape: f32[2,1,32], index: 8, kind: input, shape index: {}]   ;;  %s3120_s9 = inlined_call_operand.vmem [shape: f32[2,1,32], index: 9, kind: input, shape index: {}]   ;;  %s3121_s10 = inlined_call_operand.vmem [shape: f32[2,32,64], index: 10, kind: input, shape index: {}]   ;;  %s3122_s11 = inlined_call_operand.vmem [shape: f32[2,1,64], index: 11, kind: input, shape index: {}]   ;;  %s3123_s12 = inlined_call_operand.vmem [shape: f32[2,64,32], index: 12, kind: input, shape index: {}]   ;;  %s3124_s13 = inlined_call_operand.vmem [shape: f32[2,1,32], index: 13, kind: input, shape index: {}]   ;;  %s3125_s14 = inlined_call_operand.hbm [shape: f32[2,8,32], index: 14, kind: output, shape index: {}]  }
   0x1   :  { %3145 = sst [smem:[#allocation27_spill]] %s3111_s0 }
   0x2   :  { %3146 = sst [smem:[#allocation28_spill]] %s3112_s1 }
   0x3   :  { %3147 = sst [smem:[#allocation29_spill]] %s3113_s2 }
   0x4   :  { %3148 = sst [smem:[#allocation30_spill]] %s3115_s4 }
   0x5   :  { %3149 = sst [smem:[#allocation31_spill]] %s3124_s13 }
   0x6   :  { %3150 = sst [smem:[#allocation32_spill]] %s3125_s14 }
   0x7   :  { %19 = vsyncpa [#allocation4], 0 }
   0x8   :  { %21 = vsyncpa [#allocation4 + $0x1], 0 }
   0x9   :  { %22 = vsyncpa [#allocation7], 0 }
   0xa   :  { %24 = vsyncpa [#allocation7 + $0x1], 0 }
   0xb   :  { %25 = vsyncpa [#allocation5], 0 }
   0xc   :  { %27 = vsyncpa [#allocation5 + $0x1], 0  ;;  %s2658_s29 = smov 0   ;;  %s2660_s30 = smov 0  }
   0xd   :  { %s2662_s15 = smov 0   ;;  %s2664_s16 = smov 0  }
   0xe   :  { %s2666_s17 = smov 0   ;;  %s2668_s18 = smov 0  }
   0xf   :  { %s2670_s19 = smov 0   ;;  %s2672_s20 = smov 0  }
  0x10 LB: > { %3151 = sst [smem:[#allocation12_spill]] %s2533_s29  ;;  %s2064_s21 = sadd.s32 4294967295, %s2561_s20   ;;  %s2561_s20 = sphi %s2672_s20, %s33_s20   ;;  %s2557_s19 = sphi %s2670_s19, %s3207_s19   ;;  %s2553_s18 = sphi %s2668_s18, %s3206_s18   ;;  %s2549_s17 = sphi %s2666_s17, %s3205_s17   ;;  %s2545_s16 = sphi %s2664_s16, %s3204_s16   ;;  %s2541_s15 = sphi %s2662_s15, %s3203_s15   ;;  %s2537_s30 = sphi %s2660_s30, %s3202_s30   ;;  %s2533_s29 = sphi %s2658_s29, %s3201_s29  }
  0x11   : > { %3152 = sst [smem:[#allocation13_spill]] %s2537_s30  ;;  %s2065_s22 = sadd.s32 4294967294, %s2561_s20  }
  0x12   : > { %3153 = sst [smem:[#allocation14_spill]] %s2541_s15  ;;  %s42_s23 = sadd.s32 1, %s2553_s18 }
  0x13   : > { %3154 = sst [smem:[#allocation15_spill]] %s2545_s16  ;;  %s45_s24 = sadd.s32 1, %s2557_s19 }
  0x14   : > { %3155 = sst [smem:[#allocation16_spill]] %s2549_s17  ;;  %p43_p0 = scmp.ge.s32.totalorder %s42_s23, 2 }
  0x15   : > { %3156 = sst [smem:[#allocation17_spill]] %s2553_s18  ;;  %s52_s25 = sadd.s32 1, %s2541_s15 }
  0x16   : > { %3157 = sst [smem:[#allocation18_spill]] %s2557_s19  ;;  %p59_p1 = scmp.ne.s32.totalorder %s2541_s15, %s2537_s30 }
  0x17   : > { %3158 = sst [smem:[#allocation19_spill]] %s2561_s20  ;;  %p60_p2 = scmp.eq.s32.totalorder %s2561_s20, 0 }
  0x18   : > { %s3209_s23 = smov (%p43_p0, %s42_s23), 0  ;;  %s3211_s24 = smov (!%p43_p0, %s45_s24), %s2557_s19 }
  0x19   : > { %3159 = sst [smem:[#allocation20_spill]] %s3209_s23  ;;  %p2709_p3 = por %p60_p2, %p59_p1 }
  0x1a   : > { %p65_p4 = scmp.ne.s32.totalorder %s2537_s30, %s2533_s29  ;;  %p47_p5 = scmp.ge.s32.totalorder %s3211_s24, 2 }
  0x1b   : > { %p66_p6 = scmp.eq.s32.totalorder %s2064_s21, 0  ;;  %p427_p7 = scmp.eq.s32.totalorder %s2064_s21, 3 }
  0x1c   : > { %p433_p8 = scmp.eq.s32.totalorder %s2065_s22, 3  ;;  %s3213_s24 = smov (%p47_p5, %s3211_s24), 0 }
  0x1d   : > { %3161 = sst [smem:[#allocation21_spill]] %s3213_s24  ;;  %p2717_p9 = por %p66_p6, %p65_p4 }
  0x1e   : > { %p2721_p10 = por %p427_p7, %p59_p1  ;;  %s49_s23 = ssub.s32 %s2557_s19, %s3213_s24 }
  0x1f   : > { %s3162_s27 = scalar_select %p2717_p9, 1, 0 }
  0x20   : > { %s3163_s28 = scalar_select %p2721_p10, 1, 0 }
  0x21   : > { %p2727_p11 = por %p433_p8, %p65_p4  ;;  %p50_p12 = scmp.eq.s32.totalorder %s49_s23, 0 }
  0x22   : > { %3164 = sst [smem:[#allocation22_spill]] %s3163_s28  ;;  %p2296_p13 = scmp.lt.s32.totalorder %s2561_s20, 4 }
  0x23   : > { %s3165_s18 = scalar_select %p2727_p11, 1, 0 }
  0x24   : > { %s2733_s21 = sand.u32 1, %s2541_s15   ;;  %s3132_s14 = sshll.u32 %s2557_s19, 7 }
  0x25   : > { %3166 = sst [smem:[#allocation23_spill]] %s3165_s18  ;;  %s3131_s29 = sshll.u32 %s2733_s21, 3 }
  0x26   : > { %s2736_s22 = scalar_select %p50_p12, %s2541_s15, %s52_s25  }
  0x27   : > { %s3168_s0 = sld [smem:[#allocation27_spill]]  ;;  %s457_s23 = scalar_lea.vmem [#allocation3], %s3131_s29 }
  0x28   : > { %3167 = sst [smem:[#allocation24_spill]] %s2736_s22  ;;  %s464_s18 = sshll.u32 %s457_s23, 4  ;;  %s2749_s18 = int_to_ptr.vmem [resolvable:$true] %s464_s18 }
  0x29   : > { %p2753_p0 = pnand %p2296_p13, %p2709_p3  ;;  %s454_s13 = scalar_lea.sflag [#allocation4], %s2733_s21 }
  0x2b   : > { %p2401_p5 = pneg %p2753_p0 }
  0x2d   : > { %s2745_s24 = scalar_lea.hbm %s3168_s0, %s3132_s14  ;;  %s2404_s26 = scalar_lea.hbm %s3168_s0, 256 }
  0x2e   : > { %s2399_s17 = scalar_lea.hbm %s2745_s24, 128  ;;  %p2405_p3 = scmp.lt.u32.totalorder %s2745_s24, %s3168_s0 }
  0x2f   : > { %p2400_p4 = scmp.ne.s32.totalorder %s2745_s24, %s2399_s17  ;;  %p2406_p8 = scmp.lt.u32.totalorder %s2404_s26, %s2399_s17 }
  0x30   : > { %p2408_p13 = scmp.lt.u32.totalorder %s2399_s17, %s2745_s24 }
  0x31   : > { %p2402_p6 = pnand %p2401_p5, %p2400_p4  ;;  %p2407_p12 = por %p2406_p8, %p2405_p3 }
  0x33   : > { %p2403_p7 = pneg %p2402_p6  ;;  %p2409_p1 = por %p2408_p13, %p2407_p12 }
  0x35   : > { %p2410_p2 = pnand %p2409_p1, %p2403_p7 }
  0x37   : > { %2413 = shalt.err (!%p2410_p2)
}
  0x38   : > { %s2414_s15 = scalar_lea.vmem %s2749_s18, 128  ;;  %s2563_s29 = smov [#allocation3]  }
  0x39   : > { %p2415_p4 = scmp.ne.s32.totalorder %s2749_s18, %s2414_s15  ;;  %s2419_s23 = sshll.u32 %s2563_s29, 4  ;;  %s2420_s23 = int_to_ptr.vmem [resolvable:$false] %s2419_s23 }
  0x3a   : > { %s2421_s14 = scalar_lea.vmem %s2420_s23, 256  ;;  %p2422_p10 = scmp.lt.s32.totalorder %s2749_s18, %s2420_s23 }
  0x3b   : > { %p2417_p6 = pnand %p2415_p4, %p2401_p5  ;;  %p2423_p3 = scmp.lt.s32.totalorder %s2421_s14, %s2414_s15 }
  0x3d   : > { %p2418_p11 = pneg %p2417_p6  ;;  %p2424_p8 = por %p2423_p3, %p2422_p10 }
  0x3f   : > { %p2425_p12 = pnand %p2424_p8, %p2418_p11 }
  0x41   : > { %2428 = shalt.err (!%p2425_p12)
}
  0x42   : > { %2288 = dma.hbm_to_vmem [thread:$0]  (!%p2753_p0), %s2745_s24, 128, %s2749_s18, %s454_s13  }
  0x43   : > { %p3170_p1 = scmp.lt.s32.totalorder %s2561_s20, 5  ;;  %p3171_p2 = scmp.ge.s32.totalorder %s2561_s20, 1 }
  0x44   : > { %s3173_s15 = sshll.u32 %s2557_s19, 7  ;;  %s3174_s1 = sld [smem:[#allocation28_spill]] }
  0x45   : > { %p2789_p7 = pnand %p3171_p2, %p3170_p1  ;;  %s3175_s23 = sshll.u32 %s2733_s21, 3 }
  0x46   : > { %s475_s14 = scalar_lea.vmem [#allocation6], %s3175_s23  ;;  %s472_s18 = scalar_lea.sflag [#allocation7], %s2733_s21 }
  0x47   : > { %s3172_s22 = scalar_select %p2789_p7, 1, 0 }
  0x48   : > { %s482_s0 = sshll.u32 %s475_s14, 4  ;;  %s483_s0 = int_to_ptr.vmem [resolvable:$true] %s482_s0 }
  0x4a   : > { %s2798_s29 = scalar_lea.hbm %s3174_s1, %s3173_s15  ;;  %s2434_s15 = scalar_lea.hbm %s3174_s1, 256 }
  0x4b   : > { %s2429_s24 = scalar_lea.hbm %s2798_s29, 128  ;;  %p2435_p4 = scmp.lt.u32.totalorder %s2798_s29, %s3174_s1 }
  0x4c   : > { %p2430_p10 = scmp.ne.s32.totalorder %s2798_s29, %s2429_s24  ;;  %p2436_p6 = scmp.lt.u32.totalorder %s2434_s15, %s2429_s24 }
  0x4d   : > { %p2438_p8 = scmp.lt.u32.totalorder %s2429_s24, %s2798_s29 }
  0x4e   : > { %p2432_p11 = pnand %p2430_p10, %p2401_p5  ;;  %p2437_p3 = por %p2436_p6, %p2435_p4 }
  0x50   : > { %p2433_p13 = pneg %p2432_p11  ;;  %p2439_p12 = por %p2438_p8, %p2437_p3 }
  0x52   : > { %p2440_p1 = pnand %p2439_p12, %p2433_p13 }
  0x54   : > { %2443 = shalt.err (!%p2440_p1)
}
  0x55   : > { %s2444_s21 = scalar_lea.vmem %s483_s0, 128  ;;  %s2564_s23 = smov [#allocation6]  }
  0x56   : > { %p2445_p2 = scmp.ne.s32.totalorder %s483_s0, %s2444_s21  ;;  %s2449_s19 = sshll.u32 %s2564_s23, 4  ;;  %s2450_s19 = int_to_ptr.vmem [resolvable:$false] %s2449_s19 }
  0x57   : > { %s2451_s14 = scalar_lea.vmem %s2450_s19, 256  ;;  %p2452_p9 = scmp.lt.s32.totalorder %s483_s0, %s2450_s19 }
  0x58   : > { %p2447_p10 = pnand %p2445_p2, %p2401_p5  ;;  %p2453_p7 = scmp.lt.s32.totalorder %s2451_s14, %s2444_s21 }
  0x5a   : > { %p2448_p11 = pneg %p2447_p10  ;;  %p2454_p4 = por %p2453_p7, %p2452_p9 }
  0x5c   : > { %p2455_p6 = pnand %p2454_p4, %p2448_p11 }
  0x5e   : > { %2458 = shalt.err (!%p2455_p6)
}
  0x5f   : > { %2291 = dma.hbm_to_vmem [thread:$0]  (!%p2753_p0), %s2798_s29, 128, %s483_s0, %s472_s18  }
  0x60   : > { %p3176_p13 = scmp.ne.s32.totalorder %s3172_s22, 0 }
  0x62   : > { %571 = sbr.rel (%p3176_p13) target bundleno = 2681 (0xa79), region = 76 }
  0x69   : > { %s2825_s24 = sand.u32 1, %s2537_s30   ;;  %p3178_p9 = scmp.ne.s32.totalorder %s3162_s27, 0 }
  0x6a   : > { %3177 = sst [smem:[#allocation25_spill]] %s2825_s24  ;;  %s2828_s13 = sshll.u32 %s2825_s24, 3 }
  0x6b   : > { %s574_s15 = scalar_lea.sflag [#allocation4], %s2825_s24  ;;  %s577_s17 = scalar_lea.vmem [#allocation3], %s2828_s13 }
  0x6c   : > { %2520 = dma.done.wait (%p3178_p9), %s574_s15, 128  }
  0x6d   : > { %2522 = vsyncadd (%p3178_p9), %s574_s15, 4294967168  ;;  %s583_s0 = scalar_lea.sflag [#allocation7], %s2825_s24 }
  0x6e   : > { %2524 = dma.done.wait (%p3178_p9), %s583_s0, 128  }
  0x6f   : > { %2526 = vsyncadd (%p3178_p9), %s583_s0, 4294967168  ;;  %p680_p0 = scmp.lt.s32.totalorder %s2545_s16, 1  ;;  %s3179_s2 = sld [smem:[#allocation29_spill]] }
  0x70   : > { %s3180_s4 = sld [smem:[#allocation30_spill]]  ;;  %s3182_s23 = sld [smem:[#allocation31_spill]] }
  0x71   : > { %s2844_s22 = scalar_select %p680_p0, %s2545_s16, 1 }
  0x72   : > { %s2899_s14 = scalar_lea.vmem [#allocation8], %s2828_s13  ;;  %s3183_s15 = sld [smem:[#allocation15_spill]] }
  0x73   : > { %s2113_s29 = sshll.u32 %s2844_s22, 5  ;;  %s695_s30 = scalar_lea.vmem %s3116_s5, %s2844_s22 }
  0x74   : > { %s2882_s1 = scalar_lea.vmem %s3121_s10, %s2113_s29  ;;  %s715_s28 = scalar_lea.vmem %s3122_s11, %s2844_s22 }
  0x75   : > { %s684_s19 = scalar_lea.vmem %s3179_s2, %s2113_s29  ;;  %s2116_s24 = sshll.u32 %s2844_s22, 6 }
  0x76   : > { %s2857_s0 = scalar_lea.vmem %s3180_s4, %s2113_s29  ;;  %s2892_s27 = scalar_lea.vmem %s3123_s12, %s2116_s24 }
  0x77   : > { %3181 = sst [smem:[#allocation26_spill]] %s2857_s0  ;;  %s723_s2 = scalar_lea.vmem %s3182_s23, %s2844_s22 }
  0x78   : > { %p2084_p5 = scmp.ne.s32.totalorder %s3183_s15, 0 }
  0x79   : > { %v728_v0 = vld [vmem:[%s577_s17] sm:$0xff] (!%p2084_p5)  ;;  %vm729_vm0 = vcmask (!%p2084_p5), 261120  }
  0x7a   : > { %727 = sbr.rel (%p2084_p5) target bundleno = 129 (0x81), region = 88  ;;  %730 = vst.msk [vmem:[%s2899_s14] sm:$0xff] (!%p2084_p5), %vm729_vm0, %v728_v0 }
  0x81 PF: > { %v732_v1 = vld [vmem:[%s684_s19] sm:$0xff]  ;;  %v733_v2 = vld [vmem:[%s684_s19 + $0x8] sm:$0xff]  ;;  %v734_v3 = vld [vmem:[%s684_s19 + $0x10] sm:$0xff]  ;;  %v2565_v4 = vmov 0.0|0.0   ;;  %vm2566_vm1 = vmmov 0   ;;  %v2567_v7 = vmov 0.0   ;;  %s3184_s17 = scalar_lea.vmem %s3114_s3, %s2844_s22 }
  0x82   : > { %2249 = vmatprep.subr.bf16.mxu1 %v2565_v4  ;;  %v2250_v5 = vpack.c.bf16 %v733_v2, %v732_v1  ;;  %v735_v6 = vld [vmem:[%s684_s19 + $0x18] sm:$0xff]  ;;  %2165 = vmatprep.mubr.msk.f32.mxu1 %vm2566_vm1, %v2567_v7  ;;  %v2911_v9 = vld [vmem:[%s2899_s14] sm:$0xff]  ;;  %vm743_vm2 = vcmask 261120   ;;  %v2085_v10 = vld [vmem:[%s3184_s17] ss:$0 sm:$0xff]  ;;  %s2568_s29 = smov 120  }
  0x83   : > { %2178 = vmatprep.subr.mxu0 %v2567_v7  ;;  %2180 = vmatprep.mubr.msk.f32.mxu0 %vm2566_vm1, %v2567_v7  ;;  %v2253_v8 = vpack.c.bf16 %v735_v6, %v734_v3  ;;  %s2569_s19 = smov 96   ;;  %s2570_s0 = smov 80   ;;  %vm821_vm3 = vcmask 64512   ;;  %vm1157_vm4 = vcmask 130112   ;;  %vm1330_vm5 = vcmask 195712  }
  0x84   : > { %2251 = vmatpush3.bf16.msra.mxu1 %v2250_v5  ;;  %s2571_s23 = smov 88   ;;  %s2572_s15 = smov 72   ;;  %vm1503_vm6 = vcmask 261312   ;;  %vm1721_vm7 = vcmask 523264  }
  0x85   : > { %2252 = vmatprep.subr.bf16.mxu1 %v2565_v4  ;;  %s2573_s25 = smov 112   ;;  %s2574_s20 = smov 104  }
  0x86   : > { %s3185_s16 = scalar_lea.vmem [#allocation6], %s2828_s13  ;;  %s2575_s13 = smov 56  }
  0x87   : > { %v817_v22 = vld [vmem:[%s3185_s16] sm:$0xff]  ;;  %s2576_s18 = smov 64   ;;  %s2577_s26 = smov 48  }
  0x88   : > { %2254 = vmatpush3.bf16.msra.mxu1 %v2253_v8  ;;  %s2578_s21 = smov 40   ;;  %s3186_s4 = sld [smem:[#allocation26_spill]] }
  0x89   : > { %2168 = vmatprep.subr.mxu1 %v2567_v7  ;;  %s2579_s24 = smov 8   ;;  %s2580_s17 = smov 16  }
  0x8b   : > { %2166 = vmatmul.mubr.msk.f32.vlgmr.msra.gmra.mrb[0].mxu1 %vm743_vm2, %v2911_v9 }
  0x8c   : > { %2170 = vmatprep.mubr.msk.f32.mxu1 %vm2566_vm1, %v2567_v7 }
 0x15e   : > { %v813_v11 = vpop.f32.mrb[0].mxu1 }
 0x15f   : > { %v2923_v12 = vadd.f32 %v2085_v10, %v813_v11  ;;  %v2167_v13 = vpop.f32.mrb[1].mxu1 }
 0x161   : > { %986 = vrot.lane.b32.xlu1 %v2923_v12, %s2568_s29  ;;  %819 = vrot.lane.b32.xlu0 %v2923_v12, %s2569_s19  ;;  %s2581_s29 = smov 24  }
 0x165   : > { %1161 = vrot.lane.b32.xlu1 %v2923_v12, %s2570_s0  ;;  %988 = vrot.lane.b32.xlu0 %v2923_v12, %s2571_s23  ;;  %s3187_s23 = scalar_lea.vmem %s3117_s6, %s2844_s22  ;;  %s3194_s0 = scalar_lea.vmem %s3120_s9, %s2844_s22 }
 0x169   : > { %1334 = vrot.lane.b32.xlu1 %v2923_v12, %s2572_s15  ;;  %1159 = vrot.lane.b32.xlu0 %v2923_v12, %s2573_s25  ;;  %s3195_s25 = sld [smem:[#allocation32_spill]] }
 0x16d   : > { %1332 = vrot.lane.b32.xlu0 %v2923_v12, %s2574_s20  ;;  %s3188_s20 = scalar_lea.vmem %s3118_s7, %s2844_s22 }
 0x1d3   : > { %v987_v14 = vpop.permute.xlu1 %986  ;;  %v820_v15 = vpop.permute.xlu0 %819 }
 0x1d4   : > { %2169 = vmatpush3.xpose.msk.msra.mxu1 %vm821_vm3, %v820_v15 }
 0x1d5   : > { %2173 = vmatprep.subr.mxu1 %v2567_v7 }
 0x1d7   : > { %2171 = vmatmul.mubr.msk.f32.vlgmr.msra.gmra.mrb[2].mxu1 %vm821_vm3, %v2923_v12  ;;  %v989_v16 = vpop.permute.xlu0 %988  ;;  %v1162_v17 = vpop.permute.xlu1 %1161 }
 0x1d8   : > { %2179 = vmatpush3.xpose.msk.msra.mxu0 %vm821_vm3, %v989_v16  ;;  %2175 = vmatprep.mubr.msk.f32.mxu1 %vm2566_vm1, %v2567_v7 }
 0x1d9   : > { %2188 = vmatprep.subr.mxu0 %v2567_v7 }
 0x1db   : > { %2181 = vmatmul.mubr.msk.f32.vlgmr.msra.gmra.mrb[0].mxu0 %vm821_vm3, %v987_v14  ;;  %v1160_v18 = vpop.permute.xlu0 %1159  ;;  %v1335_v19 = vpop.permute.xlu1 %1334 }
 0x1dc   : > { %2189 = vmatpush3.xpose.msk.msra.mxu0 %vm821_vm3, %v1162_v17  ;;  %2190 = vmatprep.mubr.msk.f32.mxu0 %vm2566_vm1, %v2567_v7 }
 0x1dd   : > { %2198 = vmatprep.subr.mxu0 %v2567_v7 }
 0x1df   : > { %2191 = vmatmul.mubr.msk.f32.vlgmr.msra.gmra.mrb[2].mxu0 %vm821_vm3, %v1160_v18  ;;  %v1333_v20 = vpop.permute.xlu0 %1332 }
 0x1e0   : > { %2199 = vmatpush3.xpose.msk.msra.mxu0 %vm821_vm3, %v1335_v19  ;;  %2200 = vmatprep.mubr.msk.f32.mxu0 %vm2566_vm1, %v2567_v7 }
 0x1e1   : > { %2255 = vmatprep.subr.bf16.mxu0 %v2565_v4 }
 0x1e3   : > { %2201 = vmatmul.mubr.msk.f32.vlgmr.msra.gmra.mrb[4].mxu0 %vm821_vm3, %v1333_v20 }
 0x1e4   : > { %2216 = vmatprep.mubr.msk.f32.mxu0 %vm2566_vm1, %v2567_v7 }
 0x2aa   : > { %v892_v21 = vpop.f32.mrb[2].mxu1 }
 0x2ab   : > { %v896_v23 = vmul.f32 0.35355338, %v892_v21  ;;  %v2172_v24 = vpop.f32.mrb[3].mxu1  ;;  %v1506_v21 = vld [vmem:[%s3186_s4] sm:$0xff] }
 0x2ac   : > { %v1508_v24 = vld [vmem:[%s3186_s4 + $0x10] sm:$0xff] }
 0x2ad   : > { %v897_v25 = vadd.f32 %v896_v23, %v817_v22 }
 0x2ae   : > { %v1060_v26 = vpop.f32.mrb[0].mxu0 }
 0x2af   : > { %v1064_v27 = vmul.f32 0.35355338, %v1060_v26  ;;  %v2182_v28 = vpop.f32.mrb[1].mxu0  ;;  %v898_v29 = vsel %vm821_vm3, %v897_v25, -inf }
 0x2b0   : > { %899 = vmax.xlane.f32.xlu1 %v898_v29 }
 0x2b1   : > { %v1065_v30 = vadd.f32 %v1064_v27, %v817_v22 }
 0x2b2   : > { %v1233_v31 = vpop.f32.mrb[2].mxu0 }
 0x2b3   : > { %v1237_v32 = vmul.f32 0.35355338, %v1233_v31  ;;  %v2192_v33 = vpop.f32.mrb[3].mxu0  ;;  %v1066_v34 = vsel %vm821_vm3, %v1065_v30, -inf }
 0x2b4   : > { %1067 = vmax.xlane.f32.xlu0 %v1066_v34 }
 0x2b5   : > { %v1238_v35 = vadd.f32 %v1237_v32, %v817_v22 }
 0x2b6   : > { %v1406_v36 = vpop.f32.mrb[4].mxu0 }
 0x2b7   : > { %v1410_v37 = vmul.f32 0.35355338, %v1406_v36  ;;  %v2202_v38 = vpop.f32.mrb[5].mxu0  ;;  %v1239_v39 = vsel %vm821_vm3, %v1238_v35, -inf }
 0x2b8   : > { %1240 = vmax.xlane.f32.xlu0 %v1239_v39 }
 0x2b9   : > { %v1411_v40 = vadd.f32 %v1410_v37, %v817_v22  ;;  %v1507_v22 = vld [vmem:[%s3186_s4 + $0x8] sm:$0xff] }
 0x2ba   : > { %v2256_v23 = vpack.c.bf16 %v1507_v22, %v1506_v21 }
 0x2bb   : > { %v1412_v41 = vsel %vm821_vm3, %v1411_v40, -inf }
 0x2bc   : > { %1413 = vmax.xlane.f32.xlu1 %v1412_v41  ;;  %2257 = vmatpush3.bf16.msra.mxu0 %v2256_v23 }
 0x2bd   : > { %2258 = vmatprep.subr.bf16.mxu0 %v2565_v4 }
 0x2cd   : > { %1077 = vrot.lane.b32.xlu1 %v2923_v12, %s2575_s13 }
 0x33d   : > { %v900_v42 = vpop.xlane.xlu1 %899 }
 0x33e   : > { %v901_v43 = vsub.f32 %v897_v25, %v900_v42  ;;  %v1509_v25 = vld [vmem:[%s3186_s4 + $0x18] sm:$0xff] }
 0x33f   : > { %v2259_v26 = vpack.c.bf16 %v1509_v25, %v1508_v24 }
 0x340   : > { %v902_v44 = vmul.f32 1.442695, %v901_v43 }
 0x341   : > { %v1068_v45 = vpop.xlane.xlu0 %1067  ;;  %2260 = vmatpush3.bf16.msra.mxu0 %v2259_v26 }
 0x342   : > { %2379 = vpow2.f32 %v902_v44  ;;  %v1069_v46 = vsub.f32 %v1065_v30, %v1068_v45  ;;  %2267 = vmatprep.subr.bf16.mxu0 %v2565_v4  ;;  %v1621_v45 = vld [vmem:[%s2882_s1] sm:$0xff] }
 0x344   : > { %v1070_v47 = vmul.f32 1.442695, %v1069_v46  ;;  %v1622_v46 = vld [vmem:[%s2882_s1 + $0x8] sm:$0xff] }
 0x345   : > { %v1241_v57 = vpop.xlane.xlu0 %1240 }
 0x346   : > { %2381 = vpow2.f32 %v1070_v47  ;;  %v1242_v58 = vsub.f32 %v1238_v35, %v1241_v57  ;;  %v2099_v35 = vld [vmem:[%s695_s30] ss:$0 sm:$0xff]  ;;  %v2262_v47 = vpack.c.bf16 %v1622_v46, %v1621_v45  ;;  %v1711_v57 = vld [vmem:[%s2892_s27 + $0x28] sm:$0xff] }
 0x348   : > { %v1243_v59 = vmul.f32 1.442695, %v1242_v58 }
 0x349   : > { %v1414_v48 = vpop.xlane.xlu1 %1413 }
 0x34a   : > { %v1415_v49 = vsub.f32 %v1411_v40, %v1414_v48  ;;  %v1624_v48 = vld [vmem:[%s2882_s1 + $0x18] sm:$0xff] }
 0x34c   : > { %v2380_v50 = vpop.eup %2379  ;;  %v1416_v51 = vmul.f32 1.442695, %v1415_v49 }
 0x34d   : > { %v904_v52 = vsel %vm821_vm3, %v2380_v50, 0.0  ;;  %v1078_v62 = vpop.permute.xlu1 %1077 }
 0x34e   : > { %2383 = vpow2.f32 %v1416_v51  ;;  %905 = vadd.xlane.f32.xlu0 %v904_v52  ;;  %v1707_v51 = vld [vmem:[%s2892_s27 + $0x8] sm:$0xff]  ;;  %v1708_v52 = vld [vmem:[%s2892_s27 + $0x10] sm:$0xff] }
 0x34f   : > { %2385 = vpow2.f32 %v1243_v59 }
 0x350   : > { %v2382_v53 = vpop.eup %2381 }
 0x351   : > { %v1072_v54 = vsel %vm821_vm3, %v2382_v53, 0.0 }
 0x352   : > { %1073 = vadd.xlane.f32.xlu1 %v1072_v54  ;;  %v1709_v54 = vld [vmem:[%s2892_s27 + $0x18] sm:$0xff] }
 0x358   : > { %v2384_v55 = vpop.eup %2383 }
 0x359   : > { %v1418_v56 = vsel %vm821_vm3, %v2384_v55, 0.0  ;;  %v2386_v60 = vpop.eup %2385 }
 0x35a   : > { %1419 = vadd.xlane.f32.xlu1 %v1418_v56  ;;  %v1245_v61 = vsel %vm821_vm3, %v2386_v60, 0.0  ;;  %v1710_v56 = vld [vmem:[%s2892_s27 + $0x20] sm:$0xff] }
 0x35b   : > { %v2274_v58 = vpack.c.bf16 %v1711_v57, %v1710_v56 }
 0x364   : > { %909 = vrot.lane.b32.xlu0 %v2923_v12, %s2576_s18 }
 0x36b   : > { %1250 = vrot.lane.b32.xlu1 %v2923_v12, %s2577_s26 }
 0x383   : > { %1246 = vadd.xlane.f32.xlu0 %v1245_v61 }
 0x399   : > { %1423 = vrot.lane.b32.xlu0 %v2923_v12, %s2578_s21 }
 0x3db   : > { %v906_v63 = vpop.xlane.xlu0 %905 }
 0x3dc   : > { %2387 = vrcp.f32 %v906_v63  ;;  %v2101_v63 = vld [vmem:[%s3187_s23] ss:$0 sm:$0xff] }
 0x3df   : > { %v910_v0 = vpop.permute.xlu0 %909  ;;  %v1074_v1 = vpop.xlane.xlu1 %1073 }
 0x3e0   : > { %2389 = vrcp.f32 %v1074_v1  ;;  %2174 = vmatpush3.msra.mxu1 %v910_v0  ;;  %v2102_v1 = vld [vmem:[%s3188_s20] ss:$0 sm:$0xff] }
 0x3e1   : > { %2183 = vmatprep.subr.mxu1 %v2567_v7 }
 0x3e6   : > { %v2388_v2 = vpop.eup %2387 }
 0x3e7   : > { %v908_v3 = vmul.f32 %v2388_v2, %v2380_v50  ;;  %v1420_v5 = vpop.xlane.xlu1 %1419  ;;  %v1706_v50 = vld [vmem:[%s2892_s27] sm:$0xff] }
 0x3e9   : > { %2176 = vmatmul.mubr.msk.f32.vlgmr.msra.gmra.mrb[4].mxu1 %vm821_vm3, %v908_v3  ;;  %v1712_v3 = vld [vmem:[%s2892_s27 + $0x30] sm:$0xff] }
 0x3ea   : > { %v2390_v6 = vpop.eup %2389  ;;  %2184 = vmatpush3.msra.mxu1 %v1078_v62  ;;  %2185 = vmatprep.mubr.msk.f32.mxu1 %vm2566_vm1, %v2567_v7 }
 0x3eb   : > { %v1076_v8 = vmul.f32 %v2390_v6, %v2382_v53  ;;  %v1251_v10 = vpop.permute.xlu1 %1250  ;;  %2193 = vmatprep.subr.mxu1 %v2567_v7  ;;  %v2268_v53 = vpack.c.bf16 %v1707_v51, %v1706_v50 }
 0x3ed   : > { %2186 = vmatmul.mubr.msk.f32.vlgmr.msra.gmra.mrb[6].mxu1 %vm821_vm3, %v1076_v8  ;;  %v2103_v8 = vld [vmem:[%s715_s28] ss:$0 sm:$0xff]  ;;  %s3191_s28 = sld [smem:[#allocation25_spill]] }
 0x3ee   : > { %2194 = vmatpush3.msra.mxu1 %v1251_v10  ;;  %2195 = vmatprep.mubr.msk.f32.mxu1 %vm2566_vm1, %v2567_v7 }
 0x3ef   : > { %2203 = vmatprep.subr.mxu1 %v2567_v7 }
 0x3f3   : > { %s1827_s16 = scalar_lea.sflag [#allocation5], %s3191_s28 }
 0x410   : > { %v1247_v11 = vpop.xlane.xlu0 %1246 }
 0x411   : > { %2391 = vrcp.f32 %v1247_v11 }
 0x412   : > { %2393 = vrcp.f32 %v1420_v5  ;;  %v1713_v5 = vld [vmem:[%s2892_s27 + $0x38] sm:$0xff]  ;;  %s3190_s27 = sld [smem:[#allocation16_spill]] }
 0x413   : > { %v2277_v6 = vpack.c.bf16 %v1713_v5, %v1712_v3 }
 0x414   : > { %v1424_v15 = vpop.permute.xlu0 %1423 }
 0x418   : > { %s2110_s30 = sshll.u32 %s3190_s27, 7 }
 0x419   : > { %s3055_s20 = scalar_lea.hbm %s3195_s25, %s2110_s30 }
 0x41b   : > { %v2392_v12 = vpop.eup %2391 }
 0x41c   : > { %v1249_v13 = vmul.f32 %v2392_v12, %v2386_v60  ;;  %v2394_v14 = vpop.eup %2393 }
 0x41d   : > { %v1422_v16 = vmul.f32 %v2394_v14, %v2384_v55  ;;  %v2271_v55 = vpack.c.bf16 %v1709_v54, %v1708_v52  ;;  %v2105_v14 = vld [vmem:[%s723_s2] ss:$0 sm:$0xff]  ;;  %s3192_s2 = sld [smem:[#allocation22_spill]] }
 0x41e   : > { %2196 = vmatmul.mubr.msk.f32.vlgmr.msra.gmra.mrb[8].mxu1 %vm821_vm3, %v1249_v13 }
 0x41f   : > { %2204 = vmatpush3.msra.mxu1 %v1424_v15  ;;  %2205 = vmatprep.mubr.msk.f32.mxu1 %vm2566_vm1, %v2567_v7 }
 0x420   : > { %2261 = vmatprep.subr.bf16.mxu1 %v2565_v4 }
 0x422   : > { %2206 = vmatmul.mubr.msk.f32.vlgmr.msra.gmra.mrb[10].mxu1 %vm821_vm3, %v1422_v16 }
 0x423   : > { %2227 = vmatprep.mubr.msk.f32.mxu1 %vm2566_vm1, %v2567_v7  ;;  %2263 = vmatpush3.bf16.msra.mxu1 %v2262_v47  ;;  %p3196_p3 = scmp.ne.s32.totalorder %s3192_s2, 0 }
 0x424   : > { %2264 = vmatprep.subr.bf16.mxu1 %v2565_v4 }
 0x4bc   : > { %v981_v17 = vpop.f32.mrb[4].mxu1 }
 0x4bd   : > { %985 = vst.msk [vmem:[#allocation2] sm:$0xff] %vm821_vm3, %v981_v17  ;;  %v2177_v18 = vpop.f32.mrb[5].mxu1 }
 0x4c0   : > { %v1149_v19 = vpop.f32.mrb[6].mxu1 }
 0x4c1   : > { %1154 = vrot.lane.b32.xlu1 %v1149_v19, %s2579_s24  ;;  %v2187_v20 = vpop.f32.mrb[7].mxu1 }
 0x4f1   : > { %v1322_v27 = vpop.f32.mrb[8].mxu1 }
 0x4f2   : > { %1327 = vrot.lane.b32.xlu0 %v1322_v27, %s2580_s17  ;;  %v2197_v28 = vpop.f32.mrb[9].mxu1  ;;  %s3193_s17 = scalar_lea.vmem %s3119_s8, %s2844_s22  ;;  %s2582_s22 = smov [#allocation8]  }
 0x4f3   : > { %s2463_s18 = sshll.u32 %s2582_s22, 4  ;;  %s2464_s18 = int_to_ptr.vmem [resolvable:$false] %s2463_s18 }
 0x4f4   : > { %s2465_s26 = scalar_lea.vmem %s2464_s18, 256 }
 0x4f5   : > { %v1495_v29 = vpop.f32.mrb[10].mxu1 }
 0x4f6   : > { %1500 = vrot.lane.b32.xlu1 %v1495_v29, %s2581_s29  ;;  %v2207_v30 = vpop.f32.mrb[11].mxu1  ;;  %v2107_v29 = vld [vmem:[%s3193_s17] ss:$0 sm:$0xff] }
 0x533   : > { %v1155_v31 = vpop.permute.xlu1 %1154 }
 0x534   : > { %1158 = vst.msk [vmem:[#allocation2] sm:$0xff] %vm1157_vm4, %v1155_v31  ;;  %v2108_v31 = vld [vmem:[%s3194_s0] ss:$0 sm:$0xff] }
 0x564   : > { %v1328_v32 = vpop.permute.xlu0 %1327 }
 0x565   : > { %1331 = vst.msk [vmem:[#allocation2] sm:$0xff] %vm1330_vm5, %v1328_v32 }
 0x568   : > { %v1501_v33 = vpop.permute.xlu1 %1500 }
 0x569   : > { %1504 = vst.msk [vmem:[#allocation2] sm:$0xff] %vm1503_vm6, %v1501_v33 }
 0x570   : > { %v1505_v34 = vld [vmem:[#allocation2] sm:$0xff] }
 0x571   : > { %2217 = vmatmul.mubr.msk.f32.vlgmr.msra.gmra.mrb[6].mxu0 %vm743_vm2, %v1505_v34 }
 0x572   : > { %2246 = vmatprep.mubr.msk.f32.mxu0 %vm2566_vm1, %v2567_v7  ;;  %2269 = vmatpush3.bf16.msra.mxu0 %v2268_v53 }
 0x573   : > { %2270 = vmatprep.subr.bf16.mxu0 %v2565_v4 }
 0x576   : > { %2272 = vmatpush3.bf16.msra.mxu0 %v2271_v55 }
 0x577   : > { %2273 = vmatprep.subr.bf16.mxu0 %v2565_v4 }
 0x57a   : > { %2275 = vmatpush3.bf16.msra.mxu0 %v2274_v58 }
 0x57b   : > { %2276 = vmatprep.subr.bf16.mxu0 %v2565_v4 }
 0x57e   : > { %2278 = vmatpush3.bf16.msra.mxu0 %v2277_v6 }
 0x644   : > { %v1586_v36 = vpop.f32.mrb[6].mxu0 }
 0x645   : > { %v1587_v37 = vadd.f32 %v2099_v35, %v1586_v36  ;;  %v2218_v38 = vpop.f32.mrb[7].mxu0 }
 0x647   : > { %v1590_v39 = vadd.f32 %v1587_v37, %v2911_v9  ;;  %v1623_v9 = vld [vmem:[%s2882_s1 + $0x10] sm:$0xff]  ;;  %s1840_s1 = sshll.u32 %s2899_s14, 4  ;;  %s3057_s1 = int_to_ptr.vmem [resolvable:$true] %s1840_s1 }
 0x648   : > { %v2265_v49 = vpack.c.bf16 %v1624_v48, %v1623_v9  ;;  %s2459_s13 = scalar_lea.vmem %s3057_s1, 128  ;;  %p2466_p1 = scmp.lt.s32.totalorder %s3057_s1, %s2464_s18 }
 0x649   : > { %v1593_v40 = vsel %vm743_vm2, %v1590_v39, 0.0  ;;  %p2460_p7 = scmp.ne.s32.totalorder %s3057_s1, %s2459_s13  ;;  %p2467_p2 = scmp.lt.s32.totalorder %s2465_s26, %s2459_s13 }
 0x64a   : > { %1594 = vadd.xlane.f32.xlu0 %v1593_v40  ;;  %2266 = vmatpush3.bf16.msra.mxu1 %v2265_v49 }
 0x64b   : > { %p2461_p8 = pnand %p2460_p7, %p3196_p3  ;;  %p2468_p10 = por %p2467_p2, %p2466_p1 }
 0x64d   : > { %p2462_p12 = pneg %p2461_p8 }
 0x64f   : > { %p2469_p11 = pnand %p2468_p10, %p2462_p12 }
 0x6d7   : > { %v1595_v41 = vpop.xlane.xlu0 %1594 }
 0x6d8   : > { %v1597_v42 = vmul.f32 0.03125, %v1595_v41 }
 0x6da   : > { %v1598_v7 = vsub.f32 %v1590_v39, %v1597_v42 }
 0x6dc   : > { %v1599_v43 = vmul.f32 %v1598_v7, %v1598_v7 }
 0x6de   : > { %v1600_v44 = vsel %vm743_vm2, %v1599_v43, 0.0 }
 0x6df   : > { %1601 = vadd.xlane.f32.xlu1 %v1600_v44 }
 0x76c   : > { %v1602_v59 = vpop.xlane.xlu1 %1601 }
 0x76d   : > { %v1603_v60 = vmul.f32 0.03125, %v1602_v59 }
 0x76f   : > { %v1604_v61 = vadd.f32 1e-12, %v1603_v60 }
 0x771   : > { %2395 = vrsqrt.f32 %v1604_v61 }
 0x77b   : > { %v2396_v62 = vpop.eup %2395 }
 0x77c   : > { %v1606_v0 = vmul.f32 %v2396_v62, %v1598_v7 }
 0x77e   : > { %v1613_v2 = vmul.f32 %v2101_v63, %v1606_v0 }
 0x780   : > { %v1620_v4 = vadd.f32 %v2102_v1, %v1613_v2 }
 0x782   : > { %2228 = vmatmul.mubr.msk.f32.vlgmr.msra.gmra.mrb[12].mxu1 %vm743_vm2, %v1620_v4 }
 0x855   : > { %v1701_v10 = vpop.f32.mrb[12].mxu1 }
 0x856   : > { %v1702_v11 = vadd.f32 %v2103_v8, %v1701_v10  ;;  %v2229_v12 = vpop.f32.mrb[13].mxu1 }
 0x858   : > { %v1705_v13 = vmax.f32 %v1702_v11, 0.0 }
 0x85a   : > { %2247 = vmatmul.mubr.msk.f32.vlgmr.msra.gmra.mrb[8].mxu0 %vm1721_vm7, %v1705_v13 }
 0x92d   : > { %v1791_v15 = vpop.f32.mrb[8].mxu0 }
 0x92e   : > { %v1792_v16 = vadd.f32 %v2105_v14, %v1791_v15  ;;  %v2248_v17 = vpop.f32.mrb[9].mxu0 }
 0x930   : > { %v1795_v18 = vadd.f32 %v1792_v16, %v1620_v4 }
 0x932   : > { %v1798_v19 = vsel %vm743_vm2, %v1795_v18, 0.0 }
 0x933   : > { %1799 = vadd.xlane.f32.xlu0 %v1798_v19 }
 0x9c0   : > { %v1800_v20 = vpop.xlane.xlu0 %1799 }
 0x9c1   : > { %v1801_v21 = vmul.f32 0.03125, %v1800_v20 }
 0x9c3   : > { %v1802_v22 = vsub.f32 %v1795_v18, %v1801_v21 }
 0x9c5   : > { %v1803_v23 = vmul.f32 %v1802_v22, %v1802_v22 }
 0x9c7   : > { %v1804_v24 = vsel %vm743_vm2, %v1803_v23, 0.0 }
 0x9c8   : > { %1805 = vadd.xlane.f32.xlu0 %v1804_v24 }
 0xa55   : > { %v1806_v25 = vpop.xlane.xlu0 %1805 }
 0xa56   : > { %v1807_v26 = vmul.f32 0.03125, %v1806_v25 }
 0xa58   : > { %v1808_v27 = vadd.f32 1e-12, %v1807_v26 }
 0xa5a   : > { %2397 = vrsqrt.f32 %v1808_v27 }
 0xa64   : > { %v2398_v28 = vpop.eup %2397 }
 0xa65   : > { %v1810_v30 = vmul.f32 %v2398_v28, %v1802_v22 }
 0xa67   : > { %v1817_v32 = vmul.f32 %v2107_v29, %v1810_v30 }
 0xa69   : > { %v1824_v33 = vadd.f32 %v2108_v31, %v1817_v32 }
 0xa6b   : > { %1825 = vst.msk [vmem:[%s2899_s14] sm:$0xff] %vm743_vm2, %v1824_v33 }
 0xa6c   : > { %2472 = shalt.err (!%p2469_p11)
}
 0xa6d   : > { %s2473_s14 = scalar_lea.hbm %s3055_s20, 128  ;;  %s2477_s28 = scalar_lea.hbm %s3195_s25, 256 }
 0xa6e   : > { %p2474_p4 = scmp.ne.s32.totalorder %s3055_s20, %s2473_s14  ;;  %p2478_p9 = scmp.lt.u32.totalorder %s3055_s20, %s3195_s25 }
 0xa6f   : > { %p2479_p0 = scmp.lt.u32.totalorder %s2477_s28, %s2473_s14  ;;  %p2481_p7 = scmp.lt.u32.totalorder %s2473_s14, %s3055_s20 }
 0xa70   : > { %p2475_p6 = pnand %p2474_p4, %p3196_p3 }
 0xa71   : > { %p2480_p5 = por %p2479_p0, %p2478_p9 }
 0xa72   : > { %p2476_p13 = pneg %p2475_p6 }
 0xa73   : > { %p2482_p8 = por %p2481_p7, %p2480_p5 }
 0xa75   : > { %p2483_p12 = pnand %p2482_p8, %p2476_p13 }
 0xa77   : > { %2486 = shalt.err (!%p2483_p12)
}
 0xa78   : > { %2283 = dma.vmem_to_hbm [thread:$0]  (%p3196_p3), %s3057_s1, 128, %s3055_s20, %s1827_s16  }
 0xa79 PF: > { %s3197_s17 = sld [smem:[#allocation19_spill]]  ;;  %s3198_s29 = sld [smem:[#allocation12_spill]] }
 0xa7a   : > { %s3199_s19 = sld [smem:[#allocation23_spill]] }
 0xa7f   : > { %p2297_p1 = scmp.ge.s32.totalorder %s3197_s17, 2  ;;  %s1852_s0 = sand.u32 1, %s3198_s29  }
 0xa80   : > { %p3200_p2 = scmp.ne.s32.totalorder %s3199_s19, 0  ;;  %s1853_s30 = scalar_lea.sflag [#allocation5], %s1852_s0 }
 0xa82   : > { %p2293_p10 = pnand %p2297_p1, %p3200_p2 }
 0xa84   : > { %2528 = dma.done.wait (!%p2293_p10), %s1853_s30, 128  }
 0xa85   : > { %2530 = vsyncadd (!%p2293_p10), %s1853_s30, 4294967168  ;;  %s33_s20 = sadd.s32 1, %s3197_s17   ;;  %s3201_s29 = sld [smem:[#allocation13_spill]] }
 0xa86   : > { %p30_p11 = scmp.ge.s32.totalorder %s33_s20, 6   ;;  %s3202_s30 = sld [smem:[#allocation14_spill]] }
 0xa87   : > { %s3203_s15 = sld [smem:[#allocation24_spill]]  ;;  %s3204_s16 = sld [smem:[#allocation17_spill]] }
 0xa88   : > { %s3205_s17 = sld [smem:[#allocation18_spill]]  ;;  %s3206_s18 = sld [smem:[#allocation20_spill]] }
 0xa89   : > { %s3207_s19 = sld [smem:[#allocation21_spill]]  ;;  %32 = sbr.rel (!%p30_p11) target bundleno = 16 (0x10), region = 174 }
 0xa90   :  { %1858 = vsyncpa [#allocation4], 1 }
 0xa91   :  { %1860 = vsyncpa [#allocation4 + $0x1], 1 }
 0xa92   :  { %1861 = vsyncpa [#allocation7], 1 }
 0xa93   :  { %1863 = vsyncpa [#allocation7 + $0x1], 1 }
 0xa94   :  { %1864 = vsyncpa [#allocation5], 1 }
 0xa95   :  { %1866 = vsyncpa [#allocation5 + $0x1], 1 }

</bundles_post_ra>
